<compile_context>
chip_gen: v6e
topology: v6e:2x2x1
jax: 0.10.0
libtpu: 0.0.40
codegen_flags: <defaults>
</compile_context>

<pallas_src>
import jax
import jax.numpy as jnp
from jax.experimental import pallas as pl
from jax.experimental.pallas import tpu as pltpu


def _round_up(x, m):
    return ((x + m - 1) // m) * m


def _cdiv(a, b):
    return -(-a // b)


def _sublane_pack(itemsize):
    # Sublane packing factor: 32-bit -> 8, 16-bit -> 16, 8-bit -> 32.
    return max(8, 32 // max(1, itemsize))


# ---------------------------------------------------------------------------
# Kernels
# ---------------------------------------------------------------------------

def _outconv_kernel_mxu(x_ref, w_ref, b_ref, o_ref):
    # x_ref: (Cin, TM), w_ref: (Cout, Cin), b_ref: (Cout, 1), o_ref: (Cout, TM)
    acc = jnp.dot(w_ref[...], x_ref[...], preferred_element_type=jnp.float32)
    o_ref[...] = (acc + b_ref[...].astype(jnp.float32)).astype(o_ref.dtype)


def _make_outconv_kernel_vpu(cin):
    # Tiny-Cin path: unrolled VPU multiply-accumulate (hidden under DMA),
    # avoiding a contraction padded out to the 256-wide systolic dimension.
    def kernel(x_ref, w_ref, b_ref, o_ref):
        acc = jnp.broadcast_to(b_ref[...].astype(jnp.float32), o_ref.shape)
        for ci in range(cin):
            w_col = w_ref[:, ci:ci + 1].astype(jnp.float32)   # (Cout, 1) -> broadcast over lanes
            x_row = x_ref[ci:ci + 1, :].astype(jnp.float32)   # (1, TM)   -> broadcast over sublanes
            acc = acc + w_col * x_row
        o_ref[...] = acc.astype(o_ref.dtype)
    return kernel


# ---------------------------------------------------------------------------
# Tile policy
# ---------------------------------------------------------------------------

def _choose_tile_m(hw, n, cin, cout, x_itemsize, out_itemsize,
                   vmem_budget_bytes=6 * 1024 * 1024):
    """Pick the lane-axis (spatial) tile size."""
    cin_pad = _round_up(cin, _sublane_pack(x_itemsize))
    cout_pad = _round_up(cout, _sublane_pack(out_itemsize))
    # Sublane-padded, double-buffered (input + output) VMEM bytes per lane column.
    per_col = 2 * (cin_pad * x_itemsize + cout_pad * out_itemsize)
    vmem_cap = max(128, (vmem_budget_bytes // per_col) // 128 * 128)

    if hw <= 1024:
        # Full extent unless a huge channel count blows the VMEM budget.
        if hw * per_col <= vmem_budget_bytes or hw < 128:
            return hw
        return max(128, min(vmem_cap, (hw // 128) * 128))

    # Amortize the ~0.35us per-grid-step overhead: >= ~1 MiB HBM traffic/step.
    traffic_per_col = cin * x_itemsize + cout * out_itemsize
    traffic_floor = _round_up(_cdiv(1 << 20, traffic_per_col), 128)

    # Occupancy: >= 4 tiles per batch element and N * tiles >= 8 (v7x: 2 TCs).
    want_tiles = max(4, _cdiv(8, max(1, n)))
    occ_cap = max(128, _round_up(_cdiv(hw, want_tiles), 128))

    cap = min(vmem_cap, occ_cap)
    tile = cap if cap >= traffic_floor else min(traffic_floor, vmem_cap)
    if tile >= hw:
        return hw

    # Prefer a nearby 128-multiple that divides hw so the final spatial block
    # is not a lightly-loaded masked step.
    if hw % tile != 0:
        best, best_d = None, None
        lo = max(1, tile // 256)                        # ~tile/2
        hi = min(vmem_cap // 128, (2 * tile) // 128)    # ~2*tile, VMEM-capped
        for k in range(lo, hi + 1):
            cand = 128 * k
            if cand < hw and hw % cand == 0:
                d = abs(cand - tile)
                if best is None or d < best_d:
                    best, best_d = cand, d
        if best is not None:
            tile = best
    return tile


# ---------------------------------------------------------------------------
# Wrapper
# ---------------------------------------------------------------------------

def outconv_pallas(x_nchw, weight, bias, *, tile_m=None, compute_dtype=None):
    """1x1 Conv2d forward (OutConv).

    x_nchw : (N, Cin, H, W)     float32
    weight : (Cout, Cin, 1, 1)  float32 (PyTorch Conv2d layout)
    bias   : (Cout,)            float32
    compute_dtype : optional reduced-precision dtype (e.g. jnp.bfloat16) for
        the x/W HBM reads; accumulation stays f32, output keeps x's dtype.
    returns (N, Cout, H, W) with dtype of x_nchw.
    """
    N, Cin, H, W = x_nchw.shape
    Cout = weight.shape[0]
    HW = H * W
    out_dtype = x_nchw.dtype
    out_itemsize = jnp.dtype(out_dtype).itemsize

    # Layout glue: pure reshapes only, no HBM transpose pass.
    x_flat = x_nchw.reshape(N, Cin, HW)          # spatial on the lane (last) axis
    w2 = weight.reshape(Cout, Cin)
    b2 = bias.reshape(Cout, 1).astype(jnp.float32)

    if compute_dtype is not None:
        x_flat = x_flat.astype(compute_dtype)
        w2 = w2.astype(compute_dtype)
    x_itemsize = jnp.dtype(x_flat.dtype).itemsize
    w_itemsize = jnp.dtype(w2.dtype).itemsize

    if tile_m is None:
        tile_m = _choose_tile_m(HW, N, Cin, Cout, x_itemsize, out_itemsize)
    num_m = pl.cdiv(HW, tile_m)
    # Spatial tiles lead so the v7x megacore split stays even for N = 1 / odd N.
    grid = (num_m, N)

    # Estimated VMEM footprint (sublane-padded, double-buffered); raise the
    # scoped-VMEM limit only when the default (16 MiB on v5e) would be tight.
    cin_pad = _round_up(Cin, _sublane_pack(x_itemsize))
    cout_pad = _round_up(Cout, _sublane_pack(out_itemsize))
    est_vmem = (2 * tile_m * (cin_pad * x_itemsize + cout_pad * out_itemsize)
                + 2 * _round_up(Cout, _sublane_pack(w_itemsize))
                * _round_up(Cin, 128) * w_itemsize
                + 2 * cout_pad * 128 * 4)
    vmem_limit = None
    if est_vmem > (12 << 20):
        vmem_limit = min(48 << 20, int(1.5 * est_vmem) + (2 << 20))

    kernel = _make_outconv_kernel_vpu(Cin) if Cin < 32 else _outconv_kernel_mxu

    cost = pl.CostEstimate(
        flops=2 * N * HW * Cin * Cout,
        transcendentals=0,
        bytes_accessed=(N * Cin * HW * x_itemsize + Cout * Cin * w_itemsize
                        + Cout * 4 + N * Cout * HW * out_itemsize),
    )

    out_flat = pl.pallas_call(
        kernel,
        out_shape=jax.ShapeDtypeStruct((N, Cout, HW), out_dtype),
        grid=grid,
        in_specs=[
            # Batch dim squeezed (None); (Cin, tile_m) lane-dense input slab.
            pl.BlockSpec((None, Cin, tile_m), lambda m, n: (n, 0, m)),
            pl.BlockSpec((Cout, Cin), lambda m, n: (0, 0)),   # VMEM-resident weight
            pl.BlockSpec((Cout, 1), lambda m, n: (0, 0)),     # VMEM-resident bias
        ],
        out_specs=pl.BlockSpec((None, Cout, tile_m), lambda m, n: (n, 0, m)),
        compiler_params=pltpu.CompilerParams(
            dimension_semantics=("parallel", "parallel"),
            vmem_limit_bytes=vmem_limit),
        cost_estimate=cost,
    )(x_flat, w2, b2)

    return out_flat.reshape(N, Cout, H, W)


if __name__ == "__main__":
    key = jax.random.PRNGKey(0)
    k_x, k_w, k_b = jax.random.split(key, 3)

    def ref(xx, ww, bb):
        return (jnp.einsum("nchw,oc->nohw", xx, ww.reshape(ww.shape[0], -1))
                + bb.reshape(1, -1, 1, 1))

    # 1) Small shape (HW=256 -> single full-extent tile, VPU path).
    N, Cin, H, W, Cout = 2, 4, 16, 16, 3
    x = jax.random.normal(k_x, (N, Cin, H, W), dtype=jnp.float32)
    weight = jax.random.normal(k_w, (Cout, Cin, 1, 1), dtype=jnp.float32) * 0.1
    bias = jax.random.normal(k_b, (Cout,), dtype=jnp.float32) * 0.1
    y = outconv_pallas(x, weight, bias)
    jax.block_until_ready(y)
    assert y.shape == (N, Cout, H, W)
    assert jnp.allclose(y, ref(x, weight, bias), atol=1e-5, rtol=1e-5)

    # 2) Ragged spatial tiling (1600 = 3*512 + 64 -> masked partial last block).
    H2 = W2 = 40
    x2 = jax.random.normal(k_x, (N, Cin, H2, W2), dtype=jnp.float32)
    y2 = outconv_pallas(x2, weight, bias, tile_m=512)
    jax.block_until_ready(y2)
    assert jnp.allclose(y2, ref(x2, weight, bias), atol=1e-5, rtol=1e-5)

    # 3) Larger channel count -> MXU path.
    Cin3 = 64
    x3 = jax.random.normal(k_x, (1, Cin3, 16, 16), dtype=jnp.float32)
    w3 = jax.random.normal(k_w, (Cout, Cin3, 1, 1), dtype=jnp.float32) * 0.1
    y3 = outconv_pallas(x3, w3, bias)
    jax.block_until_ready(y3)
    assert jnp.allclose(y3, ref(x3, w3, bias), atol=1e-4, rtol=1e-4)

    # 4) Opt-in bf16 input path (f32 accumulation, f32 output).
    y4 = outconv_pallas(x, weight, bias, compute_dtype=jnp.bfloat16)
    jax.block_until_ready(y4)
    assert y4.dtype == jnp.float32
    assert jnp.allclose(y4, ref(x, weight, bias), atol=5e-2, rtol=5e-2)

    print("KERNEL_OK")
</pallas_src>

<mosaic_0001>
module attributes {stable_mosaic.version = 11 : i64} {
  func.func @kernel(%arg0: i32, %arg1: i32, %arg2: memref<1x4x256xf32, #tpu.memory_space<vmem>>, %arg3: memref<3x4xf32, #tpu.memory_space<vmem>>, %arg4: memref<3x1xf32, #tpu.memory_space<vmem>>, %arg5: memref<1x3x256xf32, #tpu.memory_space<vmem>>) attributes {dimension_semantics = [#tpu.dimension_semantics<parallel>, #tpu.dimension_semantics<parallel>], iteration_bounds = array<i64: 1, 2>, scalar_prefetch = 0 : i64, scratch_operands = 0 : i64, tpu.core_type = #tpu.core_type<tc>, window_params = [{transform_indices = @transform_0, window_bounds = array<i64: 1, 4, 256>}, {pipeline_mode = #tpu.pipeline_mode<synchronous>, transform_indices = @transform_1, window_bounds = array<i64: 3, 4>}, {pipeline_mode = #tpu.pipeline_mode<synchronous>, transform_indices = @transform_2, window_bounds = array<i64: 3, 1>}, {transform_indices = @transform_3, window_bounds = array<i64: 1, 3, 256>}]} {
    %c0 = arith.constant 0 : index
    %c0_0 = arith.constant 0 : index
    %0 = vector.load %arg4[%c0, %c0_0] : memref<3x1xf32, #tpu.memory_space<vmem>>, vector<3x1xf32>
    %1 = vector.shape_cast %0 : vector<3x1xf32> to vector<3x1xf32>
    %2 = vector.broadcast %1 : vector<3x1xf32> to vector<3x256xf32>
    %c0_1 = arith.constant 0 : index
    %c0_2 = arith.constant 0 : index
    %3 = vector.load %arg3[%c0_1, %c0_2] : memref<3x4xf32, #tpu.memory_space<vmem>>, vector<3x1xf32>
    %c0_3 = arith.constant 0 : index
    %c0_4 = arith.constant 0 : index
    %c0_5 = arith.constant 0 : index
    %4 = vector.load %arg2[%c0_3, %c0_4, %c0_5] : memref<1x4x256xf32, #tpu.memory_space<vmem>>, vector<1x1x256xf32>
    %5 = vector.shape_cast %4 : vector<1x1x256xf32> to vector<1x256xf32>
    %6 = vector.broadcast %3 : vector<3x1xf32> to vector<3x256xf32>
    %7 = vector.broadcast %5 : vector<1x256xf32> to vector<3x256xf32>
    %8 = arith.mulf %6, %7 : vector<3x256xf32>
    %9 = arith.addf %2, %8 : vector<3x256xf32>
    %c0_6 = arith.constant 0 : index
    %c1 = arith.constant 1 : index
    %10 = vector.load %arg3[%c0_6, %c1] : memref<3x4xf32, #tpu.memory_space<vmem>>, vector<3x1xf32>
    %c0_7 = arith.constant 0 : index
    %c1_8 = arith.constant 1 : index
    %c0_9 = arith.constant 0 : index
    %11 = vector.load %arg2[%c0_7, %c1_8, %c0_9] : memref<1x4x256xf32, #tpu.memory_space<vmem>>, vector<1x1x256xf32>
    %12 = vector.shape_cast %11 : vector<1x1x256xf32> to vector<1x256xf32>
    %13 = vector.broadcast %10 : vector<3x1xf32> to vector<3x256xf32>
    %14 = vector.broadcast %12 : vector<1x256xf32> to vector<3x256xf32>
    %15 = arith.mulf %13, %14 : vector<3x256xf32>
    %16 = arith.addf %9, %15 : vector<3x256xf32>
    %c0_10 = arith.constant 0 : index
    %c2 = arith.constant 2 : index
    %17 = vector.load %arg3[%c0_10, %c2] : memref<3x4xf32, #tpu.memory_space<vmem>>, vector<3x1xf32>
    %c0_11 = arith.constant 0 : index
    %c2_12 = arith.constant 2 : index
    %c0_13 = arith.constant 0 : index
    %18 = vector.load %arg2[%c0_11, %c2_12, %c0_13] : memref<1x4x256xf32, #tpu.memory_space<vmem>>, vector<1x1x256xf32>
    %19 = vector.shape_cast %18 : vector<1x1x256xf32> to vector<1x256xf32>
    %20 = vector.broadcast %17 : vector<3x1xf32> to vector<3x256xf32>
    %21 = vector.broadcast %19 : vector<1x256xf32> to vector<3x256xf32>
    %22 = arith.mulf %20, %21 : vector<3x256xf32>
    %23 = arith.addf %16, %22 : vector<3x256xf32>
    %c0_14 = arith.constant 0 : index
    %c3 = arith.constant 3 : index
    %24 = vector.load %arg3[%c0_14, %c3] : memref<3x4xf32, #tpu.memory_space<vmem>>, vector<3x1xf32>
    %c0_15 = arith.constant 0 : index
    %c3_16 = arith.constant 3 : index
    %c0_17 = arith.constant 0 : index
    %25 = vector.load %arg2[%c0_15, %c3_16, %c0_17] : memref<1x4x256xf32, #tpu.memory_space<vmem>>, vector<1x1x256xf32>
    %26 = vector.shape_cast %25 : vector<1x1x256xf32> to vector<1x256xf32>
    %27 = vector.broadcast %24 : vector<3x1xf32> to vector<3x256xf32>
    %28 = vector.broadcast %26 : vector<1x256xf32> to vector<3x256xf32>
    %29 = arith.mulf %27, %28 : vector<3x256xf32>
    %30 = arith.addf %23, %29 : vector<3x256xf32>
    %c0_18 = arith.constant 0 : index
    %c0_19 = arith.constant 0 : index
    %c0_20 = arith.constant 0 : index
    %31 = vector.load %arg5[%c0_18, %c0_19, %c0_20] : memref<1x3x256xf32, #tpu.memory_space<vmem>>, vector<1x3x256xf32>
    %32 = vector.shape_cast %31 : vector<1x3x256xf32> to vector<3x256xf32>
    %33 = vector.shape_cast %30 : vector<3x256xf32> to vector<1x3x256xf32>
    tpu.vector_store %arg5[%c0_18, %c0_19, %c0_20], %33 {strides = array<i32>} : memref<1x3x256xf32, #tpu.memory_space<vmem>>, vector<1x3x256xf32>,
    return
  }
  func.func @transform_0(%arg0: i32, %arg1: i32) -> (i32, i32, i32) {
    %c0_i32 = arith.constant 0 : i32
    %c0_i32_0 = arith.constant 0 : i32
    return %arg1, %c0_i32, %arg0 : i32, i32, i32
  }
  func.func @transform_1(%arg0: i32, %arg1: i32) -> (i32, i32) {
    %c0_i32 = arith.constant 0 : i32
    %c0_i32_0 = arith.constant 0 : i32
    %c0_i32_1 = arith.constant 0 : i32
    return %c0_i32, %c0_i32_0 : i32, i32
  }
  func.func @transform_2(%arg0: i32, %arg1: i32) -> (i32, i32) {
    %c0_i32 = arith.constant 0 : i32
    %c0_i32_0 = arith.constant 0 : i32
    %c0_i32_1 = arith.constant 0 : i32
    return %c0_i32, %c0_i32_0 : i32, i32
  }
  func.func @transform_3(%arg0: i32, %arg1: i32) -> (i32, i32, i32) {
    %c0_i32 = arith.constant 0 : i32
    %c0_i32_0 = arith.constant 0 : i32
    return %arg1, %c0_i32, %arg0 : i32, i32, i32
  }
}

</mosaic_0001>

<bundles_post_ra>
// kernel: tpu_custom_call.1
= control target key start
LH: loop header
LB: loop body
LE: loop exit
PB: predicated region body
PF: predicated region fallthrough
CT: control target
= control target key end

     0   :  { %8 = vsyncpa [#allocation3], 0  ;;  %s706_s0 = inlined_call_operand.hbm [shape: f32[2,4,256], index: 0, kind: input, shape index: {}]   ;;  %s707_s1 = inlined_call_operand.vmem [shape: f32[3,4], index: 1, kind: input, shape index: {}]   ;;  %s708_s2 = inlined_call_operand.vmem [shape: f32[3,1], index: 2, kind: input, shape index: {}]   ;;  %s709_s3 = inlined_call_operand.vmem [shape: f32[2,3,256], index: 3, kind: output, shape index: {}]  }
   0x1   :  { %10 = vsyncpa [#allocation3 + $0x1], 0  ;;  %s594_s12 = smov 0   ;;  %s596_s13 = smov 0  }
   0x2   :  { %s598_s14 = smov 0   ;;  %s600_s15 = smov 0  }
   0x3   :  { %s602_s16 = smov 0   ;;  %s604_s17 = smov 0  }
   0x4 LB: > { %s408_s18 = sadd.s32 4294967295, %s567_s17   ;;  %s25_s19 = sadd.s32 1, %s563_s16  ;;  %s567_s17 = sphi %s604_s17, %s16_s17   ;;  %s563_s16 = sphi %s602_s16, %s717_s16   ;;  %s559_s15 = sphi %s600_s15, %s716_s15   ;;  %s555_s14 = sphi %s598_s14, %s715_s14   ;;  %s551_s13 = sphi %s596_s13, %s714_s13   ;;  %s547_s12 = sphi %s594_s12, %s713_s12  }
   0x5   : > { %p26_p0 = scmp.ge.s32.totalorder %s25_s19, 2  ;;  %s37_s20 = sadd.s32 1, %s555_s14 }
   0x6   : > { %p44_p1 = scmp.ne.s32.totalorder %s555_s14, %s551_s13  ;;  %p45_p2 = scmp.eq.s32.totalorder %s567_s17, 0 }
   0x7   : > { %s719_s19 = smov (%p26_p0, %s25_s19), 0  ;;  %p50_p4 = scmp.ne.s32.totalorder %s551_s13, %s547_s12 }
   0x8   : > { %p630_p3 = por %p45_p2, %p44_p1  ;;  %s32_s22 = ssub.s32 %s563_s16, %s719_s19 }
   0x9   : > { %p51_p5 = scmp.eq.s32.totalorder %s408_s18, 0  ;;  %p35_p6 = scmp.eq.s32.totalorder %s32_s22, 0 }
   0xa   : > { %p432_p8 = scmp.lt.s32.totalorder %s567_s17, 2  ;;  %s150_s25 = sand.u32 1, %s555_s14  }
   0xb   : > { %p637_p7 = por %p51_p5, %p50_p4  ;;  %s424_s26 = sshll.u32 %s563_s16, 7 }
   0xc   : > { %s643_s24 = scalar_select %p35_p6, %s555_s14, %s37_s20  }
   0xd   : > { %s412_s27 = sshll.u32 %s150_s25, 3  ;;  %s162_s30 = scalar_lea.hbm %s706_s0, %s424_s26 }
   0xe   : > { %s154_s4 = scalar_lea.vmem [#allocation2], %s412_s27  ;;  %p652_p9 = pnand %p432_p8, %p630_p3 }
   0xf   : > { %s164_s5 = sshll.u32 %s154_s4, 4  ;;  %p415_p10 = scmp.ge.s32.totalorder %s567_s17, 1  ;;  %s165_s5 = int_to_ptr.vmem [resolvable:$true] %s164_s5 }
  0x10   : > { %p169_p11 = scmp.lt.s32.totalorder %s567_s17, 3  ;;  %s151_s7 = scalar_lea.sflag [#allocation3], %s150_s25 }
  0x11   : > { %p491_p12 = pneg %p652_p9  ;;  %s502_s8 = scalar_lea.vmem %s165_s5, 128 }
  0x12   : > { %p503_p13 = scmp.ne.s32.totalorder %s165_s5, %s502_s8  ;;  %s569_s9 = smov [#allocation2]  }
  0x13   : > { %s507_s10 = sshll.u32 %s569_s9, 4  ;;  %s508_s10 = int_to_ptr.vmem [resolvable:$false] %s507_s10 }
  0x14   : > { %p505_p0 = pnand %p503_p13, %p491_p12  ;;  %s509_s11 = scalar_lea.vmem %s508_s10, 256 }
  0x15   : > { %p510_p2 = scmp.lt.s32.totalorder %s165_s5, %s508_s10  ;;  %p511_p3 = scmp.lt.s32.totalorder %s509_s11, %s502_s8 }
  0x16   : > { %p506_p1 = pneg %p505_p0 }
  0x17   : > { %p512_p4 = por %p511_p3, %p510_p2 }
  0x19   : > { %p513_p5 = pnand %p512_p4, %p506_p1 }
  0x1b   : > { %516 = shalt.err (!%p513_p5)
}
  0x1c   : > { %431 = dma.hbm_to_vmem [thread:$0]  (!%p652_p9), %s162_s30, 128, %s165_s5, %s151_s7  }
  0x1d   : > { %p170_p6 = pnand %p415_p10, %p169_p11 }
  0x1e   : > { %s175_s12 = sand.u32 (!%p170_p6), 1, %s551_s13  }
  0x1f   : > { %173 = sbr.rel (%p170_p6) target bundleno = 179 (0xb3), region = 32  ;;  %s416_s18 = sshll.u32 (!%p170_p6), %s175_s12, 3 }
  0x20   : > { %s176_s20 = scalar_lea.sflag (!%p170_p6), [#allocation3], %s175_s12  ;;  %s667_s21 = scalar_lea.vmem (!%p170_p6), [#allocation2], %s416_s18 }
  0x24   : > { %542 = dma.done.wait (%p637_p7), %s176_s20, 128  }
  0x25   : > { %544 = vsyncadd (%p637_p7), %s176_s20, 4294967168  ;;  %v570_v0 = vmov 0   ;;  %v571_v1 = vmov 1   ;;  %v223_v2 = vld [vmem:[%s707_s1] sm:$0x7]  ;;  %v572_v4 = vmov 2   ;;  %v231_v6 = vlaneseq }
  0x26   : > { %485 = vset.pattern.permute.xlu0 %v570_v0  ;;  %486 = vset.pattern.permute.xlu1 %v571_v1  ;;  %v217_v3 = vld [vmem:[%s708_s2] sm:$0x7]  ;;  %v573_v5 = vmov 3   ;;  %p208_p7 = scmp.lt.s32.totalorder %s559_s15, 1 }
  0x27   : > { %227 = vperm.xlu0 %485, %v223_v2   ;;  %248 = vperm.xlu1 %486, %v223_v2   ;;  %v232_v7 = vshrl.u32 %v231_v6, 7  ;;  %v224_v10 = vld [vmem:[%s667_s21] ss:$4 sm:$0x3] }
  0x28   : > { %v419_v11 = vld [vmem:[%s667_s21 + $0x1] ss:$4 sm:$0x3]  ;;  %v420_v14 = vld [vmem:[%s667_s21 + $0x2] ss:$4 sm:$0x3] }
  0x29   : > { %v233_v8 = vsub.s32 0, %v232_v7  ;;  %v237_v9 = vsub.s32 1, %v232_v7  ;;  %v421_v23 = vld [vmem:[%s667_s21 + $0x3] ss:$4 sm:$0x3]  ;;  %s721_s15 = smov (!%p208_p7, %s559_s15), 1 }
  0x2a   : > { %s425_s23 = sshll.u32 %s721_s15, 3 }
  0x2b   : > { %220 = vperm.xlu0 %485, %v217_v3   ;;  %487 = vset.pattern.permute.xlu1 %v572_v4  ;;  %v234_v12 = vrot.slane %v224_v10, %v233_v8  ;;  %v238_v13 = vrot.slane %v224_v10, %v237_v9  ;;  %v255_v17 = vrot.slane %v419_v11, %v233_v8  ;;  %s215_s30 = scalar_lea.vmem %s709_s3, %s425_s23 }
  0x2c   : > { %269 = vperm.xlu1 %487, %v223_v2   ;;  %v259_v18 = vrot.slane %v419_v11, %v237_v9  ;;  %v276_v19 = vrot.slane %v420_v14, %v233_v8  ;;  %v280_v20 = vrot.slane %v420_v14, %v237_v9  ;;  %v297_v32 = vrot.slane %v421_v23, %v233_v8 }
  0x2d   : > { %v301_v33 = vrot.slane %v421_v23, %v237_v9 }
  0x2f   : > { %488 = vset.pattern.permute.xlu0 %v573_v5 }
  0x30   : > { %290 = vperm.xlu0 %488, %v223_v2  }
  0xa2   : > { %v228_v15 = vpop.permute.xlu0 %227  ;;  %v249_v16 = vpop.permute.xlu1 %248 }
  0xa3   : > { %v241_v21 = vmul.f32 %v234_v12, %v228_v15  ;;  %v242_v22 = vmul.f32 %v238_v13, %v228_v15  ;;  %v262_v25 = vmul.f32 %v255_v17, %v249_v16  ;;  %v263_v26 = vmul.f32 %v259_v18, %v249_v16 }
  0xa6   : > { %v221_v24 = vpop.permute.xlu0 %220 }
  0xa7   : > { %v243_v27 = vadd.f32 %v241_v21, %v221_v24  ;;  %v244_v28 = vadd.f32 %v242_v22, %v221_v24  ;;  %v270_v29 = vpop.permute.xlu1 %269 }
  0xa8   : > { %v283_v30 = vmul.f32 %v276_v19, %v270_v29  ;;  %v284_v31 = vmul.f32 %v280_v20, %v270_v29 }
  0xa9   : > { %v264_v34 = vadd.f32 %v262_v25, %v243_v27  ;;  %v265_v35 = vadd.f32 %v263_v26, %v244_v28 }
  0xab   : > { %v285_v36 = vadd.f32 %v283_v30, %v264_v34  ;;  %v286_v37 = vadd.f32 %v284_v31, %v265_v35  ;;  %v291_v38 = vpop.permute.xlu0 %290 }
  0xac   : > { %v304_v39 = vmul.f32 %v297_v32, %v291_v38  ;;  %v305_v40 = vmul.f32 %v301_v33, %v291_v38 }
  0xae   : > { %v306_v41 = vadd.f32 %v304_v39, %v285_v36  ;;  %v307_v42 = vadd.f32 %v305_v40, %v286_v37 }
  0xb0   : > { %v310_v43 = vcombine.low %v306_v41, %v307_v42 }
  0xb2   : > { %312 = vst [vmem:[%s215_s30] sm:$0x77] %v310_v43 }
  0xb3 PF: > { %s16_s17 = sadd.s32 1, %s567_s17   ;;  %s713_s12 = smov %s551_s13 }
  0xb4   : > { %p13_p8 = scmp.ge.s32.totalorder %s16_s17, 4   ;;  %s714_s13 = smov %s555_s14 }
  0xb5   : > { %s715_s14 = smov %s643_s24  ;;  %s716_s15 = smov %s563_s16 }
  0xb6   : > { %s717_s16 = smov %s719_s19  ;;  %15 = sbr.rel (!%p13_p8) target bundleno = 4 (0x4), region = 75 }
  0xbb   :  { %343 = vsyncpa [#allocation3], 1 }
  0xbc   :  { %345 = vsyncpa [#allocation3 + $0x1], 1 }

</bundles_post_ra>
